<compile_context>
chip_gen: v5e
topology: v5e:2x2
jax: 0.10.0
libtpu: 0.0.40
codegen_flags: <defaults>
</compile_context>

<pallas_src>
import jax
import jax.numpy as jnp
from jax.experimental import pallas as pl
from jax.experimental.pallas import tpu as pltpu


def _round_up(a, b):
    return ((a + b - 1) // b) * b


def nbme_head_kernel(x_ref, w_ref, lab_ref, b_ref, probs_ref, bce_ref):
    # x_ref:   (TILE_M, H)  activations in their native dtype (bf16 or f32)
    # w_ref:   (H, 1)       Linear weight, resident across the whole grid
    # lab_ref: (TILE_M, 1)  labels (f32), -1 marks ignored positions
    # b_ref:   (1,)         bias scalar in SMEM (f32)
    x = x_ref[...]
    w = w_ref[...]
    b = b_ref[0]

    # Hot path: Linear(hidden, 1) on the MXU, accumulated in f32.
    logits = jnp.dot(x, w, preferred_element_type=jnp.float32) + b   # (TILE_M, 1)

    # Eval-mode dropout is identity, so logits1..logits5 are identical and
    # (logits1 + ... + logits5) / 5 == logits; same for the 5 BCE losses.
    # TODO(synk): train-mode stochastic dropout branches (p=0.1..0.5) not modeled.
    probs_ref[...] = jax.nn.sigmoid(logits)

    # Masked, numerically-stable BCE-with-logits per element (f32).  The mean
    # over valid positions is finished in the wrapper so every grid step writes
    # a disjoint block and the grid axis stays "parallel".
    lab = lab_ref[...].astype(jnp.float32)
    mask = lab != -1.0
    z = jnp.where(mask, lab, 0.0)
    bce = jnp.maximum(logits, 0.0) - logits * z + jnp.log1p(jnp.exp(-jnp.abs(logits)))
    bce_ref[...] = jnp.where(mask, bce, 0.0)


def nbme_head(sequence_output, labels, weight, bias):
    """sequence_output: [B,S,H] (f32 or bf16); labels: [B,S] f32 (-1 = ignored);
    weight: [1,H]; bias: [1].  Returns (probs [B,S,1] f32, masked-mean BCE loss)."""
    B, S, H = sequence_output.shape
    M = B * S
    x = sequence_output.reshape(M, H)                 # keep native dtype (bf16 ok)
    w = weight.reshape(H, 1).astype(x.dtype)
    b = bias.reshape(1).astype(jnp.float32)
    lab = labels.reshape(M, 1).astype(jnp.float32)

    # Size the M-tile so one double-buffered x tile fits comfortably in v7x's
    # ~32 MiB scoped VMEM (<= 8 MiB per buffer), capped at 1024 rows.
    itemsize = jnp.dtype(x.dtype).itemsize
    tile_m = (8 * 1024 * 1024) // max(H * itemsize, 1)
    tile_m = max(8, min(1024, (tile_m // 8) * 8))
    tile_m = min(tile_m, _round_up(M, 8))
    m_pad = _round_up(M, tile_m)
    if m_pad != M:
        x = jnp.pad(x, ((0, m_pad - M), (0, 0)))
        lab = jnp.pad(lab, ((0, m_pad - M), (0, 0)), constant_values=-1.0)
    num_tiles = m_pad // tile_m

    bytes_accessed = (m_pad * H * itemsize          # x read (dominant)
                      + H * itemsize                # w (once)
                      + m_pad * 4                   # labels
                      + 2 * m_pad * 4)              # probs + bce writes

    probs, bce = pl.pallas_call(
        nbme_head_kernel,
        out_shape=(
            jax.ShapeDtypeStruct((m_pad, 1), jnp.float32),   # probs
            jax.ShapeDtypeStruct((m_pad, 1), jnp.float32),   # masked per-elem BCE
        ),
        grid=(num_tiles,),
        in_specs=[
            pl.BlockSpec((tile_m, H), lambda i: (i, 0)),         # x: streamed over M
            pl.BlockSpec((H, 1), lambda i: (0, 0)),              # w: resident
            pl.BlockSpec((tile_m, 1), lambda i: (i, 0)),         # labels
            pl.BlockSpec(memory_space=pltpu.MemorySpace.SMEM),   # bias scalar
        ],
        out_specs=(
            pl.BlockSpec((tile_m, 1), lambda i: (i, 0)),
            pl.BlockSpec((tile_m, 1), lambda i: (i, 0)),
        ),
        compiler_params=pltpu.CompilerParams(
            dimension_semantics=("parallel",),
            vmem_limit_bytes=32 * 1024 * 1024,
        ),
        cost_estimate=pl.CostEstimate(
            flops=2 * m_pad * H,
            transcendentals=2 * m_pad,
            bytes_accessed=bytes_accessed,
        ),
    )(x, w, lab, b)

    # Finish the masked mean (partial sums were emitted per element; padded
    # rows have label -1 so they contribute 0).  Kept in f32.
    cnt = jnp.sum((labels.reshape(-1) != -1.0).astype(jnp.float32))
    head_loss = jnp.sum(bce) / jnp.maximum(cnt, 1.0)
    probs = probs[:M].reshape(B, S, 1)
    return probs, head_loss


def nbme_gen_model_forward(sequence_output, labels, decoder_loss, weight, bias):
    """Mirrors NBMEGenModel.forward given the encoder output & decoder loss.

    Returns (logits_out, loss) like the PyTorch module:
      logits_out = sigmoid(mean of the 5 dropout-branch logits)
      loss       = 0.8 * mean(BCE losses) + 0.2 * decoder_loss
    """
    # TODO(synk): AutoModelForSeq2SeqLM forward (encoder_last_hidden_state,
    # decoder cross-entropy loss) has no Pallas equivalent here; they are inputs.
    probs, head_loss = nbme_head(sequence_output, labels, weight, bias)
    # In eval mode loss1..loss5 are identical, so their mean == head_loss.
    loss = 0.8 * head_loss + 0.2 * decoder_loss
    return probs, loss


if __name__ == "__main__":
    B, S, H = 2, 8, 32  # batch, seq, hidden
    key = jax.random.PRNGKey(0)
    k_seq, k_lab, k_w, k_b = jax.random.split(key, 4)

    # Synthetic encoder_last_hidden_state (stand-in for the transformer output).
    sequence_output = jax.random.normal(k_seq, (B, S, H), dtype=jnp.float32)

    # Labels in {0, 1}, with some positions set to -1 (ignored by the loss).
    labels = jax.random.bernoulli(k_lab, 0.5, (B, S)).astype(jnp.float32)
    labels = labels.at[:, -2:].set(-1.0)

    # Deterministic nn.Linear(hidden, 1) init: U(-1/sqrt(H), 1/sqrt(H)).
    bound = 1.0 / (H ** 0.5)
    weight = jax.random.uniform(k_w, (1, H), jnp.float32, -bound, bound)
    bias = jax.random.uniform(k_b, (1,), jnp.float32, -bound, bound)

    decoder_loss = jnp.float32(0.0)  # stand-in for transformer_out.loss

    probs, loss = nbme_gen_model_forward(sequence_output, labels, decoder_loss,
                                         weight, bias)
    jax.block_until_ready((probs, loss))

    # Reference check in plain JAX.
    ref_logits = sequence_output.reshape(B * S, H) @ weight.reshape(H, 1) + bias[0]
    ref_probs = jax.nn.sigmoid(ref_logits).reshape(B, S, 1)
    lab_flat = labels.reshape(-1)
    lg_flat = ref_logits.reshape(-1)
    m = lab_flat != -1.0
    z = jnp.where(m, lab_flat, 0.0)
    bce = jnp.maximum(lg_flat, 0.0) - lg_flat * z + jnp.log1p(jnp.exp(-jnp.abs(lg_flat)))
    ref_loss = 0.8 * (jnp.sum(jnp.where(m, bce, 0.0)) / jnp.sum(m)) + 0.2 * decoder_loss

    assert jnp.allclose(probs, ref_probs, atol=1e-5), "probs mismatch"
    assert jnp.allclose(loss, ref_loss, atol=1e-5), "loss mismatch"
    print("KERNEL_OK")
</pallas_src>

<mosaic_0001>
module attributes {stable_mosaic.version = 11 : i64} {
  func.func @nbme_head_kernel(%arg0: i32, %arg1: memref<16x32xf32, #tpu.memory_space<vmem>>, %arg2: memref<32x1xf32, #tpu.memory_space<vmem>>, %arg3: memref<16x1xf32, #tpu.memory_space<vmem>>, %arg4: memref<1xf32, #tpu.memory_space<smem>>, %arg5: memref<16x1xf32, #tpu.memory_space<vmem>>, %arg6: memref<16x1xf32, #tpu.memory_space<vmem>>) attributes {dimension_semantics = [#tpu.dimension_semantics<parallel>], iteration_bounds = array<i64: 1>, scalar_prefetch = 0 : i64, scratch_operands = 0 : i64, tpu.core_type = #tpu.core_type<tc>, window_params = [{transform_indices = @transform_0, window_bounds = array<i64: 16, 32>}, {pipeline_mode = #tpu.pipeline_mode<synchronous>, transform_indices = @transform_1, window_bounds = array<i64: 32, 1>}, {transform_indices = @transform_2, window_bounds = array<i64: 16, 1>}, {transform_indices = @transform_3, window_bounds = array<i64: 1>}, {transform_indices = @transform_4, window_bounds = array<i64: 16, 1>}, {transform_indices = @transform_5, window_bounds = array<i64: 16, 1>}]} {
    %c0 = arith.constant 0 : index
    %c0_0 = arith.constant 0 : index
    %0 = vector.load %arg1[%c0, %c0_0] : memref<16x32xf32, #tpu.memory_space<vmem>>, vector<16x32xf32>
    %c0_1 = arith.constant 0 : index
    %c0_2 = arith.constant 0 : index
    %1 = vector.load %arg2[%c0_1, %c0_2] : memref<32x1xf32, #tpu.memory_space<vmem>>, vector<32x1xf32>
    %c0_3 = arith.constant 0 : index
    %2 = memref.load %arg4[%c0_3] : memref<1xf32, #tpu.memory_space<smem>>
    %cst = arith.constant dense<0.000000e+00> : vector<16x1xf32>
    %3 = tpu.matmul %0, %1, %cst {dimension_numbers = #tpu.dot_dimension_numbers<[1], [0], [0], [1], [0, 0, 1, 1], [], []>} : vector<16x32xf32>, vector<32x1xf32>, vector<16x1xf32> -> vector<16x1xf32>
    %4 = vector.broadcast %2 : f32 to vector<16x1xf32>
    %5 = arith.addf %3, %4 : vector<16x1xf32>
    %6 = arith.negf %5 : vector<16x1xf32>
    %7 = math.exp %6 : vector<16x1xf32>
    %cst_4 = arith.constant 1.000000e+00 : f32
    %8 = vector.broadcast %cst_4 : f32 to vector<16x1xf32>
    %9 = arith.addf %8, %7 : vector<16x1xf32>
    %10 = arith.divf %8, %9 : vector<16x1xf32>
    %c0_5 = arith.constant 0 : index
    %c0_6 = arith.constant 0 : index
    %11 = vector.load %arg5[%c0_5, %c0_6] : memref<16x1xf32, #tpu.memory_space<vmem>>, vector<16x1xf32>
    tpu.vector_store %arg5[%c0_5, %c0_6], %10 {strides = array<i32>} : memref<16x1xf32, #tpu.memory_space<vmem>>, vector<16x1xf32>,
    %c0_7 = arith.constant 0 : index
    %c0_8 = arith.constant 0 : index
    %12 = vector.load %arg3[%c0_7, %c0_8] : memref<16x1xf32, #tpu.memory_space<vmem>>, vector<16x1xf32>
    %cst_9 = arith.constant -1.000000e+00 : f32
    %13 = vector.broadcast %cst_9 : f32 to vector<16x1xf32>
    %14 = arith.cmpf one, %12, %13 : vector<16x1xf32>
    %cst_10 = arith.constant 0.000000e+00 : f32
    %15 = vector.broadcast %cst_10 : f32 to vector<16x1xf32>
    %16 = arith.select %14, %12, %15 : vector<16x1xi1>, vector<16x1xf32>
    %cst_11 = arith.constant 0.000000e+00 : f32
    %17 = vector.broadcast %cst_11 : f32 to vector<16x1xf32>
    %18 = arith.maximumf %5, %17 : vector<16x1xf32>
    %19 = arith.mulf %5, %16 : vector<16x1xf32>
    %20 = arith.subf %18, %19 : vector<16x1xf32>
    %21 = math.absf %5 : vector<16x1xf32>
    %cst_12 = arith.constant 0.000000e+00 : f32
    %22 = vector.broadcast %cst_12 : f32 to vector<16x1xf32>
    %23 = arith.subf %22, %21 : vector<16x1xf32>
    %24 = math.exp %23 : vector<16x1xf32>
    %25 = math.log1p %24 : vector<16x1xf32>
    %26 = arith.addf %20, %25 : vector<16x1xf32>
    %cst_13 = arith.constant 0.000000e+00 : f32
    %27 = vector.broadcast %cst_13 : f32 to vector<16x1xf32>
    %28 = arith.select %14, %26, %27 : vector<16x1xi1>, vector<16x1xf32>
    %c0_14 = arith.constant 0 : index
    %c0_15 = arith.constant 0 : index
    %29 = vector.load %arg6[%c0_14, %c0_15] : memref<16x1xf32, #tpu.memory_space<vmem>>, vector<16x1xf32>
    tpu.vector_store %arg6[%c0_14, %c0_15], %28 {strides = array<i32>} : memref<16x1xf32, #tpu.memory_space<vmem>>, vector<16x1xf32>,
    return
  }
  func.func @transform_0(%arg0: i32) -> (i32, i32) {
    %c0_i32 = arith.constant 0 : i32
    %c0_i32_0 = arith.constant 0 : i32
    return %arg0, %c0_i32 : i32, i32
  }
  func.func @transform_1(%arg0: i32) -> (i32, i32) {
    %c0_i32 = arith.constant 0 : i32
    %c0_i32_0 = arith.constant 0 : i32
    %c0_i32_1 = arith.constant 0 : i32
    return %c0_i32, %c0_i32_0 : i32, i32
  }
  func.func @transform_2(%arg0: i32) -> (i32, i32) {
    %c0_i32 = arith.constant 0 : i32
    %c0_i32_0 = arith.constant 0 : i32
    return %arg0, %c0_i32 : i32, i32
  }
  func.func @transform_3(%arg0: i32) -> i32 {
    %c0_i32 = arith.constant 0 : i32
    %c0_i32_0 = arith.constant 0 : i32
    return %c0_i32 : i32
  }
  func.func @transform_4(%arg0: i32) -> (i32, i32) {
    %c0_i32 = arith.constant 0 : i32
    %c0_i32_0 = arith.constant 0 : i32
    return %arg0, %c0_i32 : i32, i32
  }
  func.func @transform_5(%arg0: i32) -> (i32, i32) {
    %c0_i32 = arith.constant 0 : i32
    %c0_i32_0 = arith.constant 0 : i32
    return %arg0, %c0_i32 : i32, i32
  }
}

</mosaic_0001>

<bundles_post_ra>
// kernel: tpu_custom_call.1
= control target key start
LH: loop header
LB: loop body
LE: loop exit
PB: predicated region body
PF: predicated region fallthrough
CT: control target
= control target key end

     0   :  { %vm28_vm0 = vcmask 261120   ;;  %vm96_vm3 = vcmask 7168   ;;  %s279_s1 = inlined_call_operand.vmem [shape: f32[32,1], index: 1, kind: input, shape index: {}]   ;;  %s280_s0 = inlined_call_operand.vmem [shape: f32[16,32], index: 0, kind: input, shape index: {}]   ;;  %s281_s3 = inlined_call_operand.<no memory space> [shape: f32[1], index: 3, kind: input, shape index: {}]   ;;  %s282_s2 = inlined_call_operand.vmem [shape: f32[16,1], index: 2, kind: input, shape index: {}]   ;;  %s283_s4 = inlined_call_operand.vmem [shape: f32[16,1], index: 4, kind: output, shape index: {0}]   ;;  %s284_s5 = inlined_call_operand.vmem [shape: f32[16,1], index: 5, kind: output, shape index: {1}]  }
   0x1   :  { %v25_v0 = vld [vmem:[%s279_s1 + $0x18] sm:$0xff]  ;;  %v24_v1 = vld [vmem:[%s279_s1 + $0x10] sm:$0xff]  ;;  %v23_v2 = vld [vmem:[%s279_s1 + $0x8] sm:$0xff]  ;;  %v27_v6 = vstv %s281_s3 }
   0x2   :  { %47 = vmatpush.msra.mxu0 %v25_v0  ;;  %155 = vmatpush.msra.mxu1 %v25_v0  ;;  %v22_v3 = vld [vmem:[%s279_s1] sm:$0xff]  ;;  %v21_v5 = vld [vmem:[%s280_s0 + $0x8] sm:$0xff] }
   0x3   :  { %v20_v4 = vld [vmem:[%s280_s0] sm:$0xff]  ;;  %v234_v20 = vld [vmem:[%s282_s2 + $0x8] sm:$0xff] }
   0x4   :  { %48 = vmatpush.msra.mxu0 %v24_v1  ;;  %156 = vmatpush.msra.mxu1 %v24_v1  ;;  %v229_v18 = vld [vmem:[%s282_s2] sm:$0xff]  ;;  %vm102_vm2 = vcmp.ne.f32.partialorder %v234_v20, -1.0 }
   0x5   :  { %vm101_vm1 = vcmp.ne.f32.partialorder %v229_v18, -1.0  ;;  %v104_v27 = vsel %vm102_vm2, %v234_v20, 0.0 }
   0x6   :  { %49 = vmatpush.msra.mxu0 %v23_v2  ;;  %157 = vmatpush.msra.mxu1 %v23_v2  ;;  %v103_v25 = vsel %vm101_vm1, %v229_v18, 0.0 }
   0x8   :  { %50 = vmatpush.msra.mxu0 %v22_v3  ;;  %158 = vmatpush.msra.mxu1 %v22_v3 }
   0x9   :  { %151 = vmatmul.msk.f32.vlgmr.msra.gmra.mxu0 %vm28_vm0, %v20_v4  ;;  %152 = vmatmul.msk.f32.vlgmr.msra.gmra.mxu1 %vm28_vm0, %v21_v5 }
  0x86   :  { %v52_v7 = vpop.f32.mrf.mxu0  ;;  %v55_v8 = vpop.f32.mrf.mxu1 }
  0x87   :  { %v53_v9 = vadd.f32 %v52_v7, %v27_v6  ;;  %v56_v10 = vadd.f32 %v55_v8, %v27_v6 }
  0x89   :  { %v153_v11 = vmul.f32 -1.442695, %v53_v9  ;;  %v111_v12 = vand.u32 2147483647, %v53_v9  ;;  %v154_v13 = vmul.f32 -1.442695, %v56_v10  ;;  %v107_v31 = vmul.f32 %v103_v25, %v53_v9 }
  0x8a   :  { %v112_v14 = vand.u32 2147483647, %v56_v10  ;;  %v105_v30 = vmax.f32 %v53_v9, 0.0  ;;  %v106_v34 = vmax.f32 %v56_v10, 0.0  ;;  %v108_v35 = vmul.f32 %v104_v27, %v56_v10 }
  0x8b   :  { %159 = vpow2.f32 %v153_v11  ;;  %v113_v15 = vsub.f32 0.0, %v111_v12 }
  0x8c   :  { %161 = vpow2.f32 %v154_v13  ;;  %v114_v16 = vsub.f32 0.0, %v112_v14  ;;  %v109_v41 = vsub.f32 %v105_v30, %v107_v31  ;;  %v110_v44 = vsub.f32 %v106_v34, %v108_v35 }
  0x8d   :  { %v115_v17 = vmul.f32 1.442695, %v113_v15 }
  0x8e   :  { %v117_v19 = vmul.f32 1.442695, %v114_v16 }
  0x8f   :  { %163 = vpow2.f32 %v115_v17 }
  0x90   :  { %165 = vpow2.f32 %v117_v19 }
  0x91   :  { %v160_v21 = vpop.eup %159 }
  0x92   :  { %v162_v22 = vpop.eup %161  ;;  %v64_v23 = vadd.f32 1.0, %v160_v21 }
  0x93   :  { %v238_v24 = vadd.f32 1.0, %v162_v22 }
  0x94   :  { %167 = vrcp.f32 %v64_v23  ;;  %vm71_vm4 = vweird.f32 %v64_v23  ;;  %v75_v47 = vand.u32 2147483647, %v64_v23  ;;  %v77_v48 = vand.u32 2147483648, %v64_v23 }
  0x95   :  { %v164_v26 = vpop.eup %163  ;;  %169 = vrcp.f32 %v238_v24  ;;  %v90_v53 = vand.u32 2147483647, %v238_v24  ;;  %v92_v54 = vand.u32 2147483648, %v238_v24  ;;  %vm86_vm8 = vweird.f32 %v238_v24 }
  0x96   :  { %v166_v28 = vpop.eup %165  ;;  %v119_v29 = vadd.f32 1.0, %v164_v26  ;;  %v122_v32 = vmul.f32 -0.5, %v164_v26  ;;  %v125_v38 = vand.u32 2147483647, %v164_v26  ;;  %v78_v0 = vor.u32 1.1754944e-38, %v77_v48 }
  0x97   :  { %v128_v33 = vadd.f32 1.0, %v166_v28  ;;  %v131_v36 = vmul.f32 -0.5, %v166_v28  ;;  %v134_v49 = vand.u32 2147483647, %v166_v28  ;;  %vm76_vm11 = vcmp.eq.f32.partialorder %v75_v47, 8.507059e+37 }
  0x98   :  { %171 = vlog2.f32 %v119_v29  ;;  %v123_v42 = vadd.f32 1.0, %v122_v32  ;;  %vm248_vm5 = vcmp.lt.f32.partialorder %v125_v38, 0.0004427343  ;;  %v93_v5 = vor.u32 1.1754944e-38, %v92_v54 }
  0x99   :  { %173 = vlog2.f32 %v128_v33  ;;  %v132_v45 = vadd.f32 1.0, %v131_v36  ;;  %vm135_vm9 = vcmp.lt.f32.partialorder %v134_v49, 0.0004427343  ;;  %vm91_vm13 = vcmp.eq.f32.partialorder %v90_v53, 8.507059e+37 }
  0x9a   :  { %v168_v37 = vpop.eup %167  ;;  %v124_v58 = vmul.f32 %v164_v26, %v123_v42 }
  0x9b   :  { %v170_v39 = vpop.eup %169  ;;  %v67_v40 = vmul.f32 %v168_v37, %v64_v23  ;;  %vm72_vm6 = vweird.f32 %v168_v37  ;;  %v133_v61 = vmul.f32 %v166_v28, %v132_v45 }
  0x9c   :  { %v82_v43 = vmul.f32 %v170_v39, %v238_v24  ;;  %vm87_vm7 = vweird.f32 %v170_v39  ;;  %vm73_vm10 = vmor %vm71_vm4, %vm72_vm6 }
  0x9d   :  { %v68_v46 = vsub.f32 1.0, %v67_v40  ;;  %vm88_vm12 = vmor %vm86_vm8, %vm87_vm7 }
  0x9e   :  { %v172_v50 = vpop.eup %171  ;;  %v83_v52 = vsub.f32 1.0, %v82_v43 }
  0x9f   :  { %v174_v55 = vpop.eup %173  ;;  %v69_v56 = vmul.f32 %v168_v37, %v68_v46  ;;  %v121_v57 = vmul.f32 0.6931472, %v172_v50 }
  0xa0   :  { %v84_v59 = vmul.f32 %v170_v39, %v83_v52  ;;  %v130_v60 = vmul.f32 0.6931472, %v174_v55 }
  0xa1   :  { %v70_v62 = vadd.f32 %v168_v37, %v69_v56  ;;  %v127_v63 = vsel %vm248_vm5, %v124_v58, %v121_v57 }
  0xa2   :  { %v137_v1 = vadd.f32 %v127_v63, %v109_v41  ;;  %v85_v2 = vadd.f32 %v170_v39, %v84_v59  ;;  %v136_v3 = vsel %vm135_vm9, %v133_v61, %v130_v60 }
  0xa3   :  { %v74_v4 = vsel %vm73_vm10, %v168_v37, %v70_v62  ;;  %v138_v6 = vadd.f32 %v136_v3, %v110_v44 }
  0xa4   :  { %v79_v7 = vsel %vm76_vm11, %v78_v0, %v74_v4  ;;  %v139_v8 = vsel %vm101_vm1, %v137_v1, 0.0  ;;  %v89_v9 = vsel %vm88_vm12, %v170_v39, %v85_v2 }
  0xa5   :  { %97 = vst.msk [vmem:[%s283_s4] sm:$0xff] %vm96_vm3, %v79_v7  ;;  %v94_v10 = vsel %vm91_vm13, %v93_v5, %v89_v9  ;;  %v140_v11 = vsel %vm102_vm2, %v138_v6, 0.0 }
  0xa6   :  { %141 = vst.msk [vmem:[%s284_s5] sm:$0xff] %vm96_vm3, %v139_v8 }
  0xa7   :  { %98 = vst.msk [vmem:[%s283_s4 + $0x8] sm:$0xff] %vm96_vm3, %v94_v10 }
  0xa8   :  { %142 = vst.msk [vmem:[%s284_s5 + $0x8] sm:$0xff] %vm96_vm3, %v140_v11 }

</bundles_post_ra>
